<compile_context>
chip_gen: v7x
topology: tpu7x:2x2x1
jax: 0.10.0
libtpu: 0.0.40
codegen_flags: <defaults>
</compile_context>

<pallas_src>
import functools
import math

import jax
import jax.numpy as jnp
import numpy as np
from jax import lax
from jax.experimental import pallas as pl
from jax.experimental.pallas import tpu as pltpu

_LANE = 128
_NEG_BIG = -1e30
_EPS = 1e-12


def _round_up(n, m):
    return ((n + m - 1) // m) * m


def _pad2(a, rows, cols):
    pr, pc = rows - a.shape[0], cols - a.shape[1]
    if pr == 0 and pc == 0:
        return a
    return jnp.pad(a, ((0, pr), (0, pc)))


def _choose_tm(n):
    """Row-tile size: multiple of 8, <=256, small enough that the streamed
    (TM, N_p) adjacency+mask bf16 tiles (double-buffered) plus the in-kernel
    f32/bf16 copies of `a` stay well inside v7x's 64 MiB VMEM."""
    tm = min(256, _round_up(n, 8))
    while tm > 8:
        n_p = _round_up(n, tm)
        # 2 bufs x (adj + mask) bf16 = 8 B/elem, + f32 a (4) + bf16 a (2)
        if tm * n_p * 14 <= 40 * (1 << 20):
            break
        tm //= 2
    return tm


def _vmem_limit(block_bytes, temp_bytes):
    """Scoped-VMEM request: double-buffered blocks + temporaries + headroom,
    clamped to v7x's 64 MiB physical VMEM (defaults are only 16/32 MiB)."""
    est = 2 * int(sum(block_bytes)) + int(temp_bytes)
    return int(max(16 << 20, min(int(est * 1.5) + (2 << 20), 60 << 20)))


def _masked_log_softmax_rows(x, n_valid):
    """Stable log_softmax over axis=1 restricted to the first n_valid columns
    (remaining columns are zero lane-padding)."""
    cols = lax.broadcasted_iota(jnp.int32, x.shape, 1)
    xm = jnp.where(cols < n_valid, x, _NEG_BIG)
    m = jnp.max(xm, axis=1, keepdims=True)
    z = xm - m
    lse = jnp.log(jnp.sum(jnp.exp(z), axis=1, keepdims=True))
    return z - lse


def _row_norm_scale(adj_tile, mask_tile):
    """a = adj*mask (f32) and 1/max(row_L1(a), eps) -- applied after the matmul
    instead of materializing F.normalize(adj*mask, p=1, dim=1)."""
    a = adj_tile.astype(jnp.float32) * mask_tile.astype(jnp.float32)
    l1 = jnp.sum(jnp.abs(a), axis=1, keepdims=True)
    inv = pl.reciprocal(jnp.maximum(l1, _EPS), approx=True)
    return a, inv


# ---------------------------------------------------------------------------
# Kernels
# ---------------------------------------------------------------------------
def _rhs1_kernel(x_ref, w1_ref, y_ref, rhs_ref):
    # rhs1 = concat(x @ W1, y)   (bf16 operands, f32 accumulation)
    support = jnp.dot(x_ref[...], w1_ref[...],
                      preferred_element_type=jnp.float32)
    rhs_ref[...] = jnp.concatenate(
        [support.astype(rhs_ref.dtype), y_ref[...].astype(rhs_ref.dtype)],
        axis=1)


def _layer1_kernel(adj_ref, mask_ref, rhs1_ref, b1_ref, w2_ref, rhs2_ref, *,
                   hp):
    # Layer-1 adjacency aggregation + bias + ReLU, fused with the (row-local)
    # layer-2 dense projection h @ W2.  Output rhs2 = concat(h@W2, y_hat1).
    a, inv = _row_norm_scale(adj_ref[...], mask_ref[...])
    s = jnp.dot(a.astype(jnp.bfloat16), rhs1_ref[...],
                preferred_element_type=jnp.float32) * inv
    h = jnp.maximum(s[:, :hp] + b1_ref[...], 0.0)   # ReLU; dropout = identity
    support2 = jnp.dot(h.astype(jnp.bfloat16), w2_ref[...],
                       preferred_element_type=jnp.float32)
    rhs2_ref[...] = jnp.concatenate(
        [support2.astype(rhs2_ref.dtype), s[:, hp:].astype(rhs2_ref.dtype)],
        axis=1)


def _layer2_kernel(adj_ref, mask_ref, rhs2_ref, b2_ref, out_ref, yhat_ref, *,
                   cp, nclass):
    # Layer-2 adjacency aggregation + bias + row-wise log_softmax (both heads).
    a, inv = _row_norm_scale(adj_ref[...], mask_ref[...])
    s = jnp.dot(a.astype(jnp.bfloat16), rhs2_ref[...],
                preferred_element_type=jnp.float32) * inv
    logits = s[:, :cp] + b2_ref[...]
    yhat = s[:, cp:]
    out_ref[...] = _masked_log_softmax_rows(logits, nclass).astype(out_ref.dtype)
    yhat_ref[...] = _masked_log_softmax_rows(yhat, nclass).astype(yhat_ref.dtype)


# ---------------------------------------------------------------------------
# Wrapper
# ---------------------------------------------------------------------------
@jax.jit
def gcn_lpa_forward(x, adj, y, params):
    """Eval-mode GCNLPA.forward.

    params = (w1, b1, mask1, w2, b2, mask2); biases may be 1-D or (1, d).
    Returns (log_softmax(logits), log_softmax(y_hat)), each [N, nclass] f32.
    """
    w1, b1, mask1, w2, b2, mask2 = params
    n, nfeat = x.shape
    nhid = w1.shape[1]
    nclass = w2.shape[1]

    fp = _round_up(nfeat, _LANE)
    hp = _round_up(nhid, _LANE)
    cp = _round_up(nclass, _LANE)
    tm = _choose_tm(n)
    n_p = _round_up(n, tm)
    g = n_p // tm

    bf16, f32 = jnp.bfloat16, jnp.float32

    # bf16 MXU operands (zero padding keeps the math exact); f32 biases.
    xp = _pad2(x.astype(bf16), n_p, fp)
    yp = _pad2(y.astype(bf16), n_p, cp)
    adjp = _pad2(adj.astype(bf16), n_p, n_p)
    m1p = _pad2(mask1.astype(bf16), n_p, n_p)
    m2p = _pad2(mask2.astype(bf16), n_p, n_p)
    w1p = _pad2(w1.astype(bf16), fp, hp)
    w2p = _pad2(w2.astype(bf16), hp, cp)
    b1p = _pad2(jnp.reshape(b1, (1, -1)).astype(f32), 1, hp)
    b2p = _pad2(jnp.reshape(b2, (1, -1)).astype(f32), 1, cp)

    w_rhs1 = hp + cp
    w_rhs2 = 2 * cp
    par = ("parallel",)

    # ---- call A: rhs1 = concat(x @ W1, y) (row tiled) ----------------------
    rhs1 = pl.pallas_call(
        _rhs1_kernel,
        grid=(g,),
        in_specs=[pl.BlockSpec((tm, fp), lambda i: (i, 0)),
                  pl.BlockSpec((fp, hp), lambda i: (0, 0)),
                  pl.BlockSpec((tm, cp), lambda i: (i, 0))],
        out_specs=pl.BlockSpec((tm, w_rhs1), lambda i: (i, 0)),
        out_shape=jax.ShapeDtypeStruct((n_p, w_rhs1), bf16),
        compiler_params=pltpu.CompilerParams(
            dimension_semantics=par,
            vmem_limit_bytes=_vmem_limit(
                [tm * fp * 2, fp * hp * 2, tm * cp * 2, tm * w_rhs1 * 2],
                tm * w_rhs1 * 4)),
        cost_estimate=pl.CostEstimate(
            flops=2 * n_p * fp * hp, transcendentals=0,
            bytes_accessed=2 * (n_p * fp + fp * hp + n_p * cp + n_p * w_rhs1)),
    )(xp, w1p, yp)

    # ---- call B: layer-1 adjacency + ReLU + layer-2 projection (row tiled) --
    rhs2 = pl.pallas_call(
        functools.partial(_layer1_kernel, hp=hp),
        grid=(g,),
        in_specs=[pl.BlockSpec((tm, n_p), lambda i: (i, 0)),
                  pl.BlockSpec((tm, n_p), lambda i: (i, 0)),
                  pl.BlockSpec((n_p, w_rhs1), lambda i: (0, 0)),
                  pl.BlockSpec((1, hp), lambda i: (0, 0)),
                  pl.BlockSpec((hp, cp), lambda i: (0, 0))],
        out_specs=pl.BlockSpec((tm, w_rhs2), lambda i: (i, 0)),
        out_shape=jax.ShapeDtypeStruct((n_p, w_rhs2), bf16),
        compiler_params=pltpu.CompilerParams(
            dimension_semantics=par,
            vmem_limit_bytes=_vmem_limit(
                [tm * n_p * 2, tm * n_p * 2, n_p * w_rhs1 * 2, hp * 4,
                 hp * cp * 2, tm * w_rhs2 * 2],
                tm * n_p * 6 + tm * (w_rhs1 + hp + cp) * 4)),
        cost_estimate=pl.CostEstimate(
            flops=2 * n_p * n_p * w_rhs1 + 2 * n_p * hp * cp,
            transcendentals=n_p,
            bytes_accessed=2 * (2 * n_p * n_p + n_p * w_rhs1 + n_p * w_rhs2)),
    )(adjp, m1p, rhs1, b1p, w2p)

    # ---- call C: layer-2 adjacency + bias + log_softmax (row tiled) ---------
    out_p, yhat_p = pl.pallas_call(
        functools.partial(_layer2_kernel, cp=cp, nclass=nclass),
        grid=(g,),
        in_specs=[pl.BlockSpec((tm, n_p), lambda i: (i, 0)),
                  pl.BlockSpec((tm, n_p), lambda i: (i, 0)),
                  pl.BlockSpec((n_p, w_rhs2), lambda i: (0, 0)),
                  pl.BlockSpec((1, cp), lambda i: (0, 0))],
        out_specs=(pl.BlockSpec((tm, cp), lambda i: (i, 0)),
                   pl.BlockSpec((tm, cp), lambda i: (i, 0))),
        out_shape=(jax.ShapeDtypeStruct((n_p, cp), f32),
                   jax.ShapeDtypeStruct((n_p, cp), f32)),
        compiler_params=pltpu.CompilerParams(
            dimension_semantics=par,
            vmem_limit_bytes=_vmem_limit(
                [tm * n_p * 2, tm * n_p * 2, n_p * w_rhs2 * 2, cp * 4,
                 tm * cp * 4, tm * cp * 4],
                tm * n_p * 6 + tm * w_rhs2 * 8)),
        cost_estimate=pl.CostEstimate(
            flops=2 * n_p * n_p * w_rhs2,
            transcendentals=n_p * w_rhs2 + n_p,
            bytes_accessed=2 * (2 * n_p * n_p + n_p * w_rhs2) + 8 * n_p * cp),
    )(adjp, m2p, rhs2, b2p)

    # Drop row/lane padding outside the kernels (cheap XLA slice).
    return out_p[:n, :nclass], yhat_p[:n, :nclass]


# ---------------------------------------------------------------------------
# Pure-JAX reference (f32) of the same math (mirrors the PyTorch module)
# ---------------------------------------------------------------------------
def _reference_forward(x, adj, y, params):
    def layer(xx, w, b, mask, yy):
        support = xx @ w
        a = adj * mask
        a = a / jnp.maximum(jnp.sum(jnp.abs(a), axis=1, keepdims=True), 1e-12)
        return a @ support + b, a @ yy

    w1, b1, mask1, w2, b2, mask2 = params
    h, y_hat = layer(x, w1, b1, mask1, y)
    h = jax.nn.relu(h)
    logits, y_hat = layer(h, w2, b2, mask2, y_hat)
    return jax.nn.log_softmax(logits, axis=1), jax.nn.log_softmax(y_hat, axis=1)


if __name__ == "__main__":
    # Small shapes: N nodes, nfeat -> nhid -> nclass
    N, nfeat, nhid, nclass = 16, 32, 32, 8

    key = jax.random.PRNGKey(0)
    k_x, k_adj, k_y, k_w1, k_b1, k_w2, k_b2 = jax.random.split(key, 7)

    # Node features
    x = jax.random.normal(k_x, (N, nfeat), dtype=jnp.float32)

    # Dense symmetric adjacency with self-loops (values in [0, 1))
    a_raw = jax.random.uniform(k_adj, (N, N), dtype=jnp.float32)
    adj = jnp.where(a_raw > 0.7, a_raw, 0.0)
    adj = jnp.maximum(adj, adj.T) + jnp.eye(N, dtype=jnp.float32)

    # One-hot labels
    labels = jax.random.randint(k_y, (N,), 0, nclass)
    y = jax.nn.one_hot(labels, nclass, dtype=jnp.float32)

    # Parameter init mirroring reset_parameters(): uniform(-stdv, stdv)
    stdv1 = 1.0 / math.sqrt(nhid)
    w1 = jax.random.uniform(k_w1, (nfeat, nhid), jnp.float32, -stdv1, stdv1)
    b1 = jax.random.uniform(k_b1, (nhid,), jnp.float32, -stdv1, stdv1)
    stdv2 = 1.0 / math.sqrt(nclass)
    w2 = jax.random.uniform(k_w2, (nhid, nclass), jnp.float32, -stdv2, stdv2)
    b2 = jax.random.uniform(k_b2, (nclass,), jnp.float32, -stdv2, stdv2)

    # bf16 MXU operands with f32 accumulation -> loosened tolerances vs f32 ref.
    RTOL, ATOL = 5e-2, 8e-2

    # ---- test 1: adjacency_mask == adj for both layers (module init state) --
    params_shared = (w1, b1, adj, w2, b2, adj)
    logits, yhat = gcn_lpa_forward(x, adj, y, params_shared)
    jax.block_until_ready((logits, yhat))
    ref_logits, ref_yhat = _reference_forward(x, adj, y, params_shared)
    np.testing.assert_allclose(np.asarray(logits), np.asarray(ref_logits),
                               rtol=RTOL, atol=ATOL)
    np.testing.assert_allclose(np.asarray(yhat), np.asarray(ref_yhat),
                               rtol=RTOL, atol=ATOL)

    # ---- test 2: distinct (e.g. trained) masks per layer --------------------
    mask2_diff = adj * 0.75
    params_general = (w1, b1, adj, w2, b2, mask2_diff)
    logits2, yhat2 = gcn_lpa_forward(x, adj, y, params_general)
    jax.block_until_ready((logits2, yhat2))
    ref_logits2, ref_yhat2 = _reference_forward(x, adj, y, params_general)
    np.testing.assert_allclose(np.asarray(logits2), np.asarray(ref_logits2),
                               rtol=RTOL, atol=ATOL)
    np.testing.assert_allclose(np.asarray(yhat2), np.asarray(ref_yhat2),
                               rtol=RTOL, atol=ATOL)

    print("KERNEL_OK")
</pallas_src>

<mosaic_0001>
module attributes {stable_mosaic.version = 11 : i64} {
  func.func @_rhs1_kernel(%arg0: i32, %arg1: memref<16x128xbf16, #tpu.memory_space<vmem>>, %arg2: memref<128x128xbf16, #tpu.memory_space<vmem>>, %arg3: memref<16x128xbf16, #tpu.memory_space<vmem>>, %arg4: memref<16x256xbf16, #tpu.memory_space<vmem>>) attributes {dimension_semantics = [#tpu.dimension_semantics<parallel>], iteration_bounds = array<i64: 1>, scalar_prefetch = 0 : i64, scratch_operands = 0 : i64, tpu.core_type = #tpu.core_type<tc>, window_params = [{transform_indices = @transform_0, window_bounds = array<i64: 16, 128>}, {pipeline_mode = #tpu.pipeline_mode<synchronous>, transform_indices = @transform_1, window_bounds = array<i64: 128, 128>}, {transform_indices = @transform_2, window_bounds = array<i64: 16, 128>}, {transform_indices = @transform_3, window_bounds = array<i64: 16, 256>}]} {
    %c0 = arith.constant 0 : index
    %c0_0 = arith.constant 0 : index
    %0 = vector.load %arg1[%c0, %c0_0] : memref<16x128xbf16, #tpu.memory_space<vmem>>, vector<16x128xbf16>
    %c0_1 = arith.constant 0 : index
    %c0_2 = arith.constant 0 : index
    %1 = vector.load %arg2[%c0_1, %c0_2] : memref<128x128xbf16, #tpu.memory_space<vmem>>, vector<128x128xbf16>
    %cst = arith.constant dense<0.000000e+00> : vector<16x128xf32>
    %2 = tpu.matmul %0, %1, %cst {dimension_numbers = #tpu.dot_dimension_numbers<[1], [0], [0], [1], [0, 0, 1, 1], [], []>} : vector<16x128xbf16>, vector<128x128xbf16>, vector<16x128xf32> -> vector<16x128xf32>
    %3 = arith.truncf %2 : vector<16x128xf32> to vector<16x128xbf16>
    %c0_3 = arith.constant 0 : index
    %c0_4 = arith.constant 0 : index
    %4 = vector.load %arg3[%c0_3, %c0_4] : memref<16x128xbf16, #tpu.memory_space<vmem>>, vector<16x128xbf16>
    %5 = tpu.concatenate %3, %4 in 1 : vector<16x128xbf16>, vector<16x128xbf16> -> vector<16x256xbf16>
    %c0_5 = arith.constant 0 : index
    %c0_6 = arith.constant 0 : index
    %6 = vector.load %arg4[%c0_5, %c0_6] : memref<16x256xbf16, #tpu.memory_space<vmem>>, vector<16x256xbf16>
    tpu.vector_store %arg4[%c0_5, %c0_6], %5 {strides = array<i32>} : memref<16x256xbf16, #tpu.memory_space<vmem>>, vector<16x256xbf16>,
    return
  }
  func.func @transform_0(%arg0: i32) -> (i32, i32) {
    %c0_i32 = arith.constant 0 : i32
    %c0_i32_0 = arith.constant 0 : i32
    return %arg0, %c0_i32 : i32, i32
  }
  func.func @transform_1(%arg0: i32) -> (i32, i32) {
    %c0_i32 = arith.constant 0 : i32
    %c0_i32_0 = arith.constant 0 : i32
    %c0_i32_1 = arith.constant 0 : i32
    return %c0_i32, %c0_i32_0 : i32, i32
  }
  func.func @transform_2(%arg0: i32) -> (i32, i32) {
    %c0_i32 = arith.constant 0 : i32
    %c0_i32_0 = arith.constant 0 : i32
    return %arg0, %c0_i32 : i32, i32
  }
  func.func @transform_3(%arg0: i32) -> (i32, i32) {
    %c0_i32 = arith.constant 0 : i32
    %c0_i32_0 = arith.constant 0 : i32
    return %arg0, %c0_i32 : i32, i32
  }
}

module attributes {stable_mosaic.version = 11 : i64} {
  func.func @_layer1_kernel(%arg0: i32, %arg1: memref<16x16xbf16, #tpu.memory_space<vmem>>, %arg2: memref<16x16xbf16, #tpu.memory_space<vmem>>, %arg3: memref<16x256xbf16, #tpu.memory_space<vmem>>, %arg4: memref<1x128xf32, #tpu.memory_space<vmem>>, %arg5: memref<128x128xbf16, #tpu.memory_space<vmem>>, %arg6: memref<16x256xbf16, #tpu.memory_space<vmem>>) attributes {dimension_semantics = [#tpu.dimension_semantics<parallel>], iteration_bounds = array<i64: 1>, scalar_prefetch = 0 : i64, scratch_operands = 0 : i64, tpu.core_type = #tpu.core_type<tc>, window_params = [{transform_indices = @transform_0, window_bounds = array<i64: 16, 16>}, {transform_indices = @transform_1, window_bounds = array<i64: 16, 16>}, {pipeline_mode = #tpu.pipeline_mode<synchronous>, transform_indices = @transform_2, window_bounds = array<i64: 16, 256>}, {pipeline_mode = #tpu.pipeline_mode<synchronous>, transform_indices = @transform_3, window_bounds = array<i64: 1, 128>}, {pipeline_mode = #tpu.pipeline_mode<synchronous>, transform_indices = @transform_4, window_bounds = array<i64: 128, 128>}, {transform_indices = @transform_5, window_bounds = array<i64: 16, 256>}]} {
    %c0 = arith.constant 0 : index
    %c0_0 = arith.constant 0 : index
    %0 = vector.load %arg1[%c0, %c0_0] : memref<16x16xbf16, #tpu.memory_space<vmem>>, vector<16x16xbf16>
    %c0_1 = arith.constant 0 : index
    %c0_2 = arith.constant 0 : index
    %1 = vector.load %arg2[%c0_1, %c0_2] : memref<16x16xbf16, #tpu.memory_space<vmem>>, vector<16x16xbf16>
    %2 = arith.extf %0 : vector<16x16xbf16> to vector<16x16xf32>
    %3 = arith.extf %1 : vector<16x16xbf16> to vector<16x16xf32>
    %4 = arith.mulf %2, %3 : vector<16x16xf32>
    %5 = math.absf %4 : vector<16x16xf32>
    %cst = arith.constant dense<0.000000e+00> : vector<16xf32>
    %6 = vector.multi_reduction <add>, %5, %cst [1] : vector<16x16xf32> to vector<16xf32>
    %7 = vector.shape_cast %6 : vector<16xf32> to vector<16x1xf32>
    %cst_3 = arith.constant 9.99999996E-13 : f32
    %8 = vector.broadcast %cst_3 : f32 to vector<16x1xf32>
    %9 = arith.maximumf %7, %8 : vector<16x1xf32>
    %10 = tpu.reciprocal %9 {approx = true} : vector<16x1xf32> -> vector<16x1xf32>
    %11 = arith.truncf %4 : vector<16x16xf32> to vector<16x16xbf16>
    %c0_4 = arith.constant 0 : index
    %c0_5 = arith.constant 0 : index
    %12 = vector.load %arg3[%c0_4, %c0_5] : memref<16x256xbf16, #tpu.memory_space<vmem>>, vector<16x256xbf16>
    %cst_6 = arith.constant dense<0.000000e+00> : vector<16x256xf32>
    %13 = tpu.matmul %11, %12, %cst_6 {dimension_numbers = #tpu.dot_dimension_numbers<[1], [0], [0], [1], [0, 0, 1, 1], [], []>} : vector<16x16xbf16>, vector<16x256xbf16>, vector<16x256xf32> -> vector<16x256xf32>
    %14 = vector.broadcast %10 : vector<16x1xf32> to vector<16x256xf32>
    %15 = arith.mulf %13, %14 : vector<16x256xf32>
    %16 = vector.extract_strided_slice %15 {offsets = [0, 0], sizes = [16, 128], strides = [1, 1]} : vector<16x256xf32> to vector<16x128xf32>
    %c0_7 = arith.constant 0 : index
    %c0_8 = arith.constant 0 : index
    %17 = vector.load %arg4[%c0_7, %c0_8] : memref<1x128xf32, #tpu.memory_space<vmem>>, vector<1x128xf32>
    %18 = vector.broadcast %17 : vector<1x128xf32> to vector<16x128xf32>
    %19 = arith.addf %16, %18 : vector<16x128xf32>
    %cst_9 = arith.constant 0.000000e+00 : f32
    %20 = vector.broadcast %cst_9 : f32 to vector<16x128xf32>
    %21 = arith.maximumf %19, %20 : vector<16x128xf32>
    %22 = arith.truncf %21 : vector<16x128xf32> to vector<16x128xbf16>
    %c0_10 = arith.constant 0 : index
    %c0_11 = arith.constant 0 : index
    %23 = vector.load %arg5[%c0_10, %c0_11] : memref<128x128xbf16, #tpu.memory_space<vmem>>, vector<128x128xbf16>
    %cst_12 = arith.constant dense<0.000000e+00> : vector<16x128xf32>
    %24 = tpu.matmul %22, %23, %cst_12 {dimension_numbers = #tpu.dot_dimension_numbers<[1], [0], [0], [1], [0, 0, 1, 1], [], []>} : vector<16x128xbf16>, vector<128x128xbf16>, vector<16x128xf32> -> vector<16x128xf32>
    %25 = arith.truncf %24 : vector<16x128xf32> to vector<16x128xbf16>
    %26 = vector.extract_strided_slice %15 {offsets = [0, 128], sizes = [16, 128], strides = [1, 1]} : vector<16x256xf32> to vector<16x128xf32>
    %27 = arith.truncf %26 : vector<16x128xf32> to vector<16x128xbf16>
    %28 = tpu.concatenate %25, %27 in 1 : vector<16x128xbf16>, vector<16x128xbf16> -> vector<16x256xbf16>
    %c0_13 = arith.constant 0 : index
    %c0_14 = arith.constant 0 : index
    %29 = vector.load %arg6[%c0_13, %c0_14] : memref<16x256xbf16, #tpu.memory_space<vmem>>, vector<16x256xbf16>
    tpu.vector_store %arg6[%c0_13, %c0_14], %28 {strides = array<i32>} : memref<16x256xbf16, #tpu.memory_space<vmem>>, vector<16x256xbf16>,
    return
  }
  func.func @transform_0(%arg0: i32) -> (i32, i32) {
    %c0_i32 = arith.constant 0 : i32
    %c0_i32_0 = arith.constant 0 : i32
    return %arg0, %c0_i32 : i32, i32
  }
  func.func @transform_1(%arg0: i32) -> (i32, i32) {
    %c0_i32 = arith.constant 0 : i32
    %c0_i32_0 = arith.constant 0 : i32
    return %arg0, %c0_i32 : i32, i32
  }
  func.func @transform_2(%arg0: i32) -> (i32, i32) {
    %c0_i32 = arith.constant 0 : i32
    %c0_i32_0 = arith.constant 0 : i32
    %c0_i32_1 = arith.constant 0 : i32
    return %c0_i32, %c0_i32_0 : i32, i32
  }
  func.func @transform_3(%arg0: i32) -> (i32, i32) {
    %c0_i32 = arith.constant 0 : i32
    %c0_i32_0 = arith.constant 0 : i32
    %c0_i32_1 = arith.constant 0 : i32
    return %c0_i32, %c0_i32_0 : i32, i32
  }
  func.func @transform_4(%arg0: i32) -> (i32, i32) {
    %c0_i32 = arith.constant 0 : i32
    %c0_i32_0 = arith.constant 0 : i32
    %c0_i32_1 = arith.constant 0 : i32
    return %c0_i32, %c0_i32_0 : i32, i32
  }
  func.func @transform_5(%arg0: i32) -> (i32, i32) {
    %c0_i32 = arith.constant 0 : i32
    %c0_i32_0 = arith.constant 0 : i32
    return %arg0, %c0_i32 : i32, i32
  }
}

module attributes {stable_mosaic.version = 11 : i64} {
  func.func @_layer2_kernel(%arg0: i32, %arg1: memref<16x16xbf16, #tpu.memory_space<vmem>>, %arg2: memref<16x16xbf16, #tpu.memory_space<vmem>>, %arg3: memref<16x256xbf16, #tpu.memory_space<vmem>>, %arg4: memref<1x128xf32, #tpu.memory_space<vmem>>, %arg5: memref<16x128xf32, #tpu.memory_space<vmem>>, %arg6: memref<16x128xf32, #tpu.memory_space<vmem>>) attributes {dimension_semantics = [#tpu.dimension_semantics<parallel>], iteration_bounds = array<i64: 1>, scalar_prefetch = 0 : i64, scratch_operands = 0 : i64, tpu.core_type = #tpu.core_type<tc>, window_params = [{transform_indices = @transform_0, window_bounds = array<i64: 16, 16>}, {transform_indices = @transform_1, window_bounds = array<i64: 16, 16>}, {pipeline_mode = #tpu.pipeline_mode<synchronous>, transform_indices = @transform_2, window_bounds = array<i64: 16, 256>}, {pipeline_mode = #tpu.pipeline_mode<synchronous>, transform_indices = @transform_3, window_bounds = array<i64: 1, 128>}, {transform_indices = @transform_4, window_bounds = array<i64: 16, 128>}, {transform_indices = @transform_5, window_bounds = array<i64: 16, 128>}]} {
    %c0 = arith.constant 0 : index
    %c0_0 = arith.constant 0 : index
    %0 = vector.load %arg1[%c0, %c0_0] : memref<16x16xbf16, #tpu.memory_space<vmem>>, vector<16x16xbf16>
    %c0_1 = arith.constant 0 : index
    %c0_2 = arith.constant 0 : index
    %1 = vector.load %arg2[%c0_1, %c0_2] : memref<16x16xbf16, #tpu.memory_space<vmem>>, vector<16x16xbf16>
    %2 = arith.extf %0 : vector<16x16xbf16> to vector<16x16xf32>
    %3 = arith.extf %1 : vector<16x16xbf16> to vector<16x16xf32>
    %4 = arith.mulf %2, %3 : vector<16x16xf32>
    %5 = math.absf %4 : vector<16x16xf32>
    %cst = arith.constant dense<0.000000e+00> : vector<16xf32>
    %6 = vector.multi_reduction <add>, %5, %cst [1] : vector<16x16xf32> to vector<16xf32>
    %7 = vector.shape_cast %6 : vector<16xf32> to vector<16x1xf32>
    %cst_3 = arith.constant 9.99999996E-13 : f32
    %8 = vector.broadcast %cst_3 : f32 to vector<16x1xf32>
    %9 = arith.maximumf %7, %8 : vector<16x1xf32>
    %10 = tpu.reciprocal %9 {approx = true} : vector<16x1xf32> -> vector<16x1xf32>
    %11 = arith.truncf %4 : vector<16x16xf32> to vector<16x16xbf16>
    %c0_4 = arith.constant 0 : index
    %c0_5 = arith.constant 0 : index
    %12 = vector.load %arg3[%c0_4, %c0_5] : memref<16x256xbf16, #tpu.memory_space<vmem>>, vector<16x256xbf16>
    %cst_6 = arith.constant dense<0.000000e+00> : vector<16x256xf32>
    %13 = tpu.matmul %11, %12, %cst_6 {dimension_numbers = #tpu.dot_dimension_numbers<[1], [0], [0], [1], [0, 0, 1, 1], [], []>} : vector<16x16xbf16>, vector<16x256xbf16>, vector<16x256xf32> -> vector<16x256xf32>
    %14 = vector.broadcast %10 : vector<16x1xf32> to vector<16x256xf32>
    %15 = arith.mulf %13, %14 : vector<16x256xf32>
    %16 = vector.extract_strided_slice %15 {offsets = [0, 0], sizes = [16, 128], strides = [1, 1]} : vector<16x256xf32> to vector<16x128xf32>
    %c0_7 = arith.constant 0 : index
    %c0_8 = arith.constant 0 : index
    %17 = vector.load %arg4[%c0_7, %c0_8] : memref<1x128xf32, #tpu.memory_space<vmem>>, vector<1x128xf32>
    %18 = vector.broadcast %17 : vector<1x128xf32> to vector<16x128xf32>
    %19 = arith.addf %16, %18 : vector<16x128xf32>
    %20 = vector.extract_strided_slice %15 {offsets = [0, 128], sizes = [16, 128], strides = [1, 1]} : vector<16x256xf32> to vector<16x128xf32>
    %21 = tpu.iota {dimensions = array<i32: 1>} : vector<16x128xi32>
    %c8_i32 = arith.constant 8 : i32
    %22 = vector.broadcast %c8_i32 : i32 to vector<16x128xi32>
    %23 = arith.cmpi slt, %21, %22 : vector<16x128xi32>
    %cst_9 = arith.constant -1.000000e+30 : f32
    %24 = vector.broadcast %cst_9 : f32 to vector<16x128xf32>
    %25 = arith.select %23, %19, %24 : vector<16x128xi1>, vector<16x128xf32>
    %cst_10 = arith.constant dense<0xFF800000> : vector<16xf32>
    %26 = vector.multi_reduction <maximumf>, %25, %cst_10 [1] : vector<16x128xf32> to vector<16xf32>
    %27 = vector.shape_cast %26 : vector<16xf32> to vector<16x1xf32>
    %28 = vector.broadcast %27 : vector<16x1xf32> to vector<16x128xf32>
    %29 = arith.subf %25, %28 : vector<16x128xf32>
    %30 = math.exp %29 : vector<16x128xf32>
    %cst_11 = arith.constant dense<0.000000e+00> : vector<16xf32>
    %31 = vector.multi_reduction <add>, %30, %cst_11 [1] : vector<16x128xf32> to vector<16xf32>
    %32 = vector.shape_cast %31 : vector<16xf32> to vector<16x1xf32>
    %33 = math.log %32 : vector<16x1xf32>
    %34 = vector.broadcast %33 : vector<16x1xf32> to vector<16x128xf32>
    %35 = arith.subf %29, %34 : vector<16x128xf32>
    %c0_12 = arith.constant 0 : index
    %c0_13 = arith.constant 0 : index
    %36 = vector.load %arg5[%c0_12, %c0_13] : memref<16x128xf32, #tpu.memory_space<vmem>>, vector<16x128xf32>
    tpu.vector_store %arg5[%c0_12, %c0_13], %35 {strides = array<i32>} : memref<16x128xf32, #tpu.memory_space<vmem>>, vector<16x128xf32>,
    %37 = tpu.iota {dimensions = array<i32: 1>} : vector<16x128xi32>
    %c8_i32_14 = arith.constant 8 : i32
    %38 = vector.broadcast %c8_i32_14 : i32 to vector<16x128xi32>
    %39 = arith.cmpi slt, %37, %38 : vector<16x128xi32>
    %cst_15 = arith.constant -1.000000e+30 : f32
    %40 = vector.broadcast %cst_15 : f32 to vector<16x128xf32>
    %41 = arith.select %39, %20, %40 : vector<16x128xi1>, vector<16x128xf32>
    %cst_16 = arith.constant dense<0xFF800000> : vector<16xf32>
    %42 = vector.multi_reduction <maximumf>, %41, %cst_16 [1] : vector<16x128xf32> to vector<16xf32>
    %43 = vector.shape_cast %42 : vector<16xf32> to vector<16x1xf32>
    %44 = vector.broadcast %43 : vector<16x1xf32> to vector<16x128xf32>
    %45 = arith.subf %41, %44 : vector<16x128xf32>
    %46 = math.exp %45 : vector<16x128xf32>
    %cst_17 = arith.constant dense<0.000000e+00> : vector<16xf32>
    %47 = vector.multi_reduction <add>, %46, %cst_17 [1] : vector<16x128xf32> to vector<16xf32>
    %48 = vector.shape_cast %47 : vector<16xf32> to vector<16x1xf32>
    %49 = math.log %48 : vector<16x1xf32>
    %50 = vector.broadcast %49 : vector<16x1xf32> to vector<16x128xf32>
    %51 = arith.subf %45, %50 : vector<16x128xf32>
    %c0_18 = arith.constant 0 : index
    %c0_19 = arith.constant 0 : index
    %52 = vector.load %arg6[%c0_18, %c0_19] : memref<16x128xf32, #tpu.memory_space<vmem>>, vector<16x128xf32>
    tpu.vector_store %arg6[%c0_18, %c0_19], %51 {strides = array<i32>} : memref<16x128xf32, #tpu.memory_space<vmem>>, vector<16x128xf32>,
    return
  }
  func.func @transform_0(%arg0: i32) -> (i32, i32) {
    %c0_i32 = arith.constant 0 : i32
    %c0_i32_0 = arith.constant 0 : i32
    return %arg0, %c0_i32 : i32, i32
  }
  func.func @transform_1(%arg0: i32) -> (i32, i32) {
    %c0_i32 = arith.constant 0 : i32
    %c0_i32_0 = arith.constant 0 : i32
    return %arg0, %c0_i32 : i32, i32
  }
  func.func @transform_2(%arg0: i32) -> (i32, i32) {
    %c0_i32 = arith.constant 0 : i32
    %c0_i32_0 = arith.constant 0 : i32
    %c0_i32_1 = arith.constant 0 : i32
    return %c0_i32, %c0_i32_0 : i32, i32
  }
  func.func @transform_3(%arg0: i32) -> (i32, i32) {
    %c0_i32 = arith.constant 0 : i32
    %c0_i32_0 = arith.constant 0 : i32
    %c0_i32_1 = arith.constant 0 : i32
    return %c0_i32, %c0_i32_0 : i32, i32
  }
  func.func @transform_4(%arg0: i32) -> (i32, i32) {
    %c0_i32 = arith.constant 0 : i32
    %c0_i32_0 = arith.constant 0 : i32
    return %arg0, %c0_i32 : i32, i32
  }
  func.func @transform_5(%arg0: i32) -> (i32, i32) {
    %c0_i32 = arith.constant 0 : i32
    %c0_i32_0 = arith.constant 0 : i32
    return %arg0, %c0_i32 : i32, i32
  }
}

</mosaic_0001>

<bundles_post_ra>
// kernel: gcn_lpa_forward.5
= control target key start
LH: loop header
LB: loop body
LE: loop exit
PB: predicated region body
PF: predicated region fallthrough
CT: control target
= control target key end

     0   :  { %v210_v1 = vmov 0   ;;  %vm32_vm0 = vcmask 130048   ;;  %v115_v20 = vlaneseq  ;;  %s268_s2 = inlined_call_operand.vmem [shape: bf16[16,256], index: 2, kind: input, shape index: {}]   ;;  %s269_s0 = inlined_call_operand.vmem [shape: bf16[16,16], index: 0, kind: input, shape index: {}]   ;;  %s270_s1 = inlined_call_operand.vmem [shape: bf16[16,16], index: 1, kind: input, shape index: {}]   ;;  %s271_s3 = inlined_call_operand.vmem [shape: f32[1,128], index: 3, kind: input, shape index: {}]   ;;  %s272_s4 = inlined_call_operand.vmem [shape: f32[16,128], index: 4, kind: output, shape index: {0}]   ;;  %s273_s5 = inlined_call_operand.vmem [shape: f32[16,128], index: 5, kind: output, shape index: {1}]  }
   0x1   :  { %v187_v0 = vld [vmem:[%s268_s2 + $0x4] ss:$8 sps:$4 sm:$0xff]   ;;  %91 = vmatprep.mubr.bf16.mxu0 %v210_v1  ;;  %v189_v2 = vld [vmem:[%s268_s2] ss:$8 sps:$4 sm:$0xff]  }
   0x2   :  { %v179_v3 = vld [vmem:[%s269_s0] sm:$0xff]   ;;  %59 = vmatprep.subr.bf16.mxu0 %v187_v0  ;;  %v116_v21 = vand.u32 127, %v115_v20 }
   0x3   :  { %v183_v4 = vld [vmem:[%s270_s1] sm:$0xff]   ;;  %v180_v5 = vunpack.c.l.bf16 %v179_v3  ;;  %v181_v6 = vunpack.c.h.bf16 %v179_v3  ;;  %60 = vmatpush1.bf16.msra.mxu0 %v189_v2 }
   0x4   :  { %v184_v7 = vunpack.c.l.bf16 %v183_v4  ;;  %v185_v8 = vunpack.c.h.bf16 %v183_v4  ;;  %v177_v25 = vld [vmem:[%s271_s3] ss:$0 sm:$0xff]  ;;  %vm117_vm1 = vcmp.lt.s32.totalorder %v116_v21, 8 }
   0x6   :  { %v28_v9 = vmul.f32 %v184_v7, %v180_v5  ;;  %v29_v10 = vmul.f32 %v185_v8, %v181_v6 }
   0x8   :  { %v43_v11 = vpack.c.bf16 %v29_v10, %v28_v9  ;;  %v30_v12 = vand.u32 2147483647, %v28_v9  ;;  %v31_v13 = vand.u32 2147483647, %v29_v10 }
   0xa   :  { %176 = vmatmul.mubr.msk.bf16.vlgmr.msra.gmra.mrb[0].mxu0 %vm32_vm0, %v43_v11  ;;  %v33_v14 = vsel %vm32_vm0, %v30_v12, 0.0  ;;  %v36_v15 = vsel %vm32_vm0, %v31_v13, 0.0 }
   0xb   :  { %34 = vadd.xlane.f32.xlu0 %v33_v14 }
   0xf   :  { %37 = vadd.xlane.f32.xlu0 %v36_v15 }
  0x98   :  { %v35_v16 = vpop.xlane.xlu0 %34 }
  0x99   :  { %v39_v18 = vmax.f32 %v35_v16, 1e-12 }
  0x9b   :  { %190 = vrcp.f32 %v39_v18 }
  0x9c   :  { %v38_v17 = vpop.xlane.xlu0 %37 }
  0x9d   :  { %v40_v19 = vmax.f32 %v38_v17, 1e-12 }
  0x9f   :  { %192 = vrcp.f32 %v40_v19 }
  0xa5   :  { %v191_v22 = vpop.eup %190 }
  0xa9   :  { %v193_v23 = vpop.eup %192 }
  0xdd   :  { %v93_v24 = vpop.f32.mrb[0].mxu0 }
  0xde   :  { %v102_v26 = vmul.f32 %v191_v22, %v93_v24  ;;  %v95_v27 = vpop.f32.mrb[1].mxu0 }
  0xdf   :  { %v103_v28 = vmul.f32 %v191_v22, %v95_v27  ;;  %v97_v29 = vpop.f32.mrb[2].mxu0 }
  0xe0   :  { %v104_v30 = vmul.f32 %v193_v23, %v97_v29  ;;  %v99_v31 = vpop.f32.mrb[3].mxu0  ;;  %v113_v32 = vadd.f32 %v177_v25, %v102_v26 }
  0xe1   :  { %v142_v33 = vsel %vm117_vm1, %v103_v28, -1e+30  ;;  %v105_v36 = vmul.f32 %v193_v23, %v99_v31 }
  0xe2   :  { %144 = vmax.xlane.f32.xlu0 %v142_v33  ;;  %v118_v34 = vsel %vm117_vm1, %v113_v32, -1e+30  ;;  %v114_v35 = vadd.f32 %v177_v25, %v104_v30 }
  0xe3   :  { %120 = vmax.xlane.f32.xlu1 %v118_v34  ;;  %v143_v38 = vsel %vm117_vm1, %v105_v36, -1e+30 }
  0xe4   :  { %v119_v37 = vsel %vm117_vm1, %v114_v35, -1e+30 }
  0xe7   :  { %122 = vmax.xlane.f32.xlu1 %v119_v37 }
  0xeb   :  { %146 = vmax.xlane.f32.xlu1 %v143_v38 }
 0x16f   :  { %v145_v39 = vpop.xlane.xlu0 %144 }
 0x170   :  { %v148_v40 = vsub.f32 %v142_v33, %v145_v39  ;;  %v121_v41 = vpop.xlane.xlu1 %120 }
 0x171   :  { %v124_v42 = vsub.f32 %v118_v34, %v121_v41 }
 0x172   :  { %v150_v44 = vmul.f32 1.442695, %v148_v40 }
 0x173   :  { %v126_v43 = vmul.f32 1.442695, %v124_v42 }
 0x174   :  { %v123_v45 = vpop.xlane.xlu1 %122 }
 0x175   :  { %194 = vpow2.f32 %v126_v43  ;;  %v125_v46 = vsub.f32 %v119_v37, %v123_v45 }
 0x176   :  { %196 = vpow2.f32 %v150_v44 }
 0x177   :  { %v128_v47 = vmul.f32 1.442695, %v125_v46 }
 0x178   :  { %v147_v48 = vpop.xlane.xlu1 %146 }
 0x179   :  { %198 = vpow2.f32 %v128_v47  ;;  %v149_v49 = vsub.f32 %v143_v38, %v147_v48 }
 0x17b   :  { %v152_v50 = vmul.f32 1.442695, %v149_v49 }
 0x17d   :  { %200 = vpow2.f32 %v152_v50 }
 0x17f   :  { %v195_v51 = vpop.eup %194 }
 0x180   :  { %130 = vadd.xlane.f32.xlu0 %v195_v51  ;;  %v197_v52 = vpop.eup %196 }
 0x183   :  { %v199_v53 = vpop.eup %198 }
 0x184   :  { %132 = vadd.xlane.f32.xlu1 %v199_v53  ;;  %154 = vadd.xlane.f32.xlu0 %v197_v52 }
 0x187   :  { %v201_v54 = vpop.eup %200 }
 0x188   :  { %156 = vadd.xlane.f32.xlu1 %v201_v54 }
 0x20d   :  { %v131_v55 = vpop.xlane.xlu0 %130 }
 0x20e   :  { %202 = vlog2.f32 %v131_v55 }
 0x211   :  { %v133_v56 = vpop.xlane.xlu1 %132  ;;  %v155_v57 = vpop.xlane.xlu0 %154 }
 0x212   :  { %204 = vlog2.f32 %v133_v56 }
 0x213   :  { %206 = vlog2.f32 %v155_v57 }
 0x215   :  { %v157_v58 = vpop.xlane.xlu1 %156 }
 0x216   :  { %208 = vlog2.f32 %v157_v58 }
 0x218   :  { %v203_v59 = vpop.eup %202 }
 0x219   :  { %v135_v60 = vmul.f32 0.6931472, %v203_v59 }
 0x21b   :  { %v138_v61 = vsub.f32 %v124_v42, %v135_v60 }
 0x21c   :  { %v205_v62 = vpop.eup %204 }
 0x21d   :  { %v207_v63 = vpop.eup %206  ;;  %140 = vst [vmem:[%s272_s4] sm:$0xff] %v138_v61  ;;  %v137_v0 = vmul.f32 0.6931472, %v205_v62 }
 0x21e   :  { %v159_v1 = vmul.f32 0.6931472, %v207_v63 }
 0x21f   :  { %v139_v2 = vsub.f32 %v125_v46, %v137_v0 }
 0x220   :  { %v209_v3 = vpop.eup %208  ;;  %v162_v4 = vsub.f32 %v148_v40, %v159_v1 }
 0x221   :  { %141 = vst [vmem:[%s272_s4 + $0x8] sm:$0xff] %v139_v2  ;;  %v161_v5 = vmul.f32 0.6931472, %v209_v3 }
 0x222   :  { %164 = vst [vmem:[%s273_s5] sm:$0xff] %v162_v4 }
 0x223   :  { %v163_v6 = vsub.f32 %v149_v49, %v161_v5 }
 0x225   :  { %165 = vst [vmem:[%s273_s5 + $0x8] sm:$0xff] %v163_v6 }

// kernel: gcn_lpa_forward.4
= control target key start
LH: loop header
LB: loop body
LE: loop exit
PB: predicated region body
PF: predicated region fallthrough
CT: control target
= control target key end

     0   :  { %v313_v1 = vmov 0   ;;  %v314_v2 = vmov 0.0   ;;  %vm33_vm0 = vcmask 130048   ;;  %vm315_vm1 = vmmov 0   ;;  %s391_s2 = inlined_call_operand.vmem [shape: bf16[16,256], index: 2, kind: input, shape index: {}]   ;;  %s392_s0 = inlined_call_operand.vmem [shape: bf16[16,16], index: 0, kind: input, shape index: {}]   ;;  %s393_s1 = inlined_call_operand.vmem [shape: bf16[16,16], index: 1, kind: input, shape index: {}]   ;;  %s394_s4 = inlined_call_operand.vmem [shape: bf16[128,128], index: 4, kind: input, shape index: {}]   ;;  %s395_s3 = inlined_call_operand.vmem [shape: f32[1,128], index: 3, kind: input, shape index: {}]   ;;  %s396_s5 = inlined_call_operand.vmem [shape: bf16[16,256], index: 5, kind: output, shape index: {}]  }
   0x1   :  { %v298_v0 = vld [vmem:[%s391_s2 + $0x4] ss:$8 sps:$4 sm:$0xff]   ;;  %92 = vmatprep.mubr.bf16.mxu0 %v313_v1  ;;  %275 = vmatprep.subr.bf16.mxu1 %v314_v2  ;;  %v300_v3 = vld [vmem:[%s391_s2] ss:$8 sps:$4 sm:$0xff]   ;;  %v303_v19 = vld [vmem:[%s394_s4 + $0x10] sm:$0xff]  }
   0x2   :  { %v259_v4 = vld [vmem:[%s392_s0] sm:$0xff]   ;;  %60 = vmatprep.subr.bf16.mxu0 %v298_v0  ;;  %v302_v11 = vld [vmem:[%s394_s4 + $0x8] sm:$0xff]   ;;  %v304_v20 = vld [vmem:[%s394_s4 + $0x18] sm:$0xff]   ;;  %291 = vmatprep.mubr.msk.bf16.mxu1 %vm315_vm1, %v314_v2 }
   0x3   :  { %v263_v5 = vld [vmem:[%s393_s1] sm:$0xff]   ;;  %v260_v6 = vunpack.c.l.bf16 %v259_v4  ;;  %v261_v7 = vunpack.c.h.bf16 %v259_v4  ;;  %61 = vmatpush1.bf16.msra.mxu0 %v300_v3  ;;  %v306_v22 = vld [vmem:[%s394_s4 + $0x28] sm:$0xff]   ;;  %v307_v23 = vld [vmem:[%s394_s4 + $0x30] sm:$0xff]  }
   0x4   :  { %v264_v8 = vunpack.c.l.bf16 %v263_v5  ;;  %v265_v9 = vunpack.c.h.bf16 %v263_v5  ;;  %v301_v10 = vld [vmem:[%s394_s4] sm:$0xff]   ;;  %v308_v24 = vld [vmem:[%s394_s4 + $0x38] sm:$0xff]  }
   0x5   :  { %276 = vmatpush3.bf16.msra.mxu1 %v301_v10  ;;  %v305_v21 = vld [vmem:[%s394_s4 + $0x20] sm:$0xff]  }
   0x6   :  { %v29_v12 = vmul.f32 %v264_v8, %v260_v6  ;;  %v30_v13 = vmul.f32 %v265_v9, %v261_v7  ;;  %277 = vmatprep.subr.bf16.mxu1 %v314_v2  ;;  %v245_v32 = vld [vmem:[%s395_s3] ss:$0 sm:$0xff] }
   0x8   :  { %v44_v14 = vpack.c.bf16 %v30_v13, %v29_v12  ;;  %v31_v15 = vand.u32 2147483647, %v29_v12  ;;  %v32_v16 = vand.u32 2147483647, %v30_v13 }
   0x9   :  { %278 = vmatpush3.bf16.msra.mxu1 %v302_v11 }
   0xa   :  { %244 = vmatmul.mubr.msk.bf16.vlgmr.msra.gmra.mrb[0].mxu0 %vm33_vm0, %v44_v14  ;;  %v34_v17 = vsel %vm33_vm0, %v31_v15, 0.0  ;;  %279 = vmatprep.subr.bf16.mxu1 %v314_v2  ;;  %v37_v18 = vsel %vm33_vm0, %v32_v16, 0.0 }
   0xb   :  { %35 = vadd.xlane.f32.xlu0 %v34_v17 }
   0xd   :  { %280 = vmatpush3.bf16.msra.mxu1 %v303_v19 }
   0xe   :  { %281 = vmatprep.subr.bf16.mxu1 %v314_v2 }
   0xf   :  { %38 = vadd.xlane.f32.xlu0 %v37_v18 }
  0x11   :  { %282 = vmatpush3.bf16.msra.mxu1 %v304_v20 }
  0x12   :  { %283 = vmatprep.subr.bf16.mxu1 %v314_v2 }
  0x15   :  { %284 = vmatpush3.bf16.msra.mxu1 %v305_v21 }
  0x16   :  { %285 = vmatprep.subr.bf16.mxu1 %v314_v2 }
  0x19   :  { %286 = vmatpush3.bf16.msra.mxu1 %v306_v22 }
  0x1a   :  { %287 = vmatprep.subr.bf16.mxu1 %v314_v2 }
  0x1d   :  { %288 = vmatpush3.bf16.msra.mxu1 %v307_v23 }
  0x1e   :  { %289 = vmatprep.subr.bf16.mxu1 %v314_v2 }
  0x21   :  { %290 = vmatpush3.bf16.msra.mxu1 %v308_v24 }
  0x98   :  { %v36_v25 = vpop.xlane.xlu0 %35 }
  0x99   :  { %v40_v27 = vmax.f32 %v36_v25, 1e-12 }
  0x9b   :  { %309 = vrcp.f32 %v40_v27 }
  0x9c   :  { %v39_v26 = vpop.xlane.xlu0 %38 }
  0x9d   :  { %v41_v28 = vmax.f32 %v39_v26, 1e-12 }
  0x9f   :  { %311 = vrcp.f32 %v41_v28 }
  0xa5   :  { %v310_v29 = vpop.eup %309 }
  0xa9   :  { %v312_v30 = vpop.eup %311 }
  0xdd   :  { %v94_v31 = vpop.f32.mrb[0].mxu0 }
  0xde   :  { %v103_v33 = vmul.f32 %v310_v29, %v94_v31  ;;  %v96_v34 = vpop.f32.mrb[1].mxu0 }
  0xdf   :  { %v104_v35 = vmul.f32 %v310_v29, %v96_v34  ;;  %v98_v36 = vpop.f32.mrb[2].mxu0 }
  0xe0   :  { %v114_v37 = vadd.f32 %v245_v32, %v103_v33  ;;  %v105_v38 = vmul.f32 %v312_v30, %v98_v36  ;;  %v100_v39 = vpop.f32.mrb[3].mxu0 }
  0xe1   :  { %v106_v40 = vmul.f32 %v312_v30, %v100_v39 }
  0xe2   :  { %v115_v41 = vadd.f32 %v245_v32, %v105_v38  ;;  %v116_v42 = vmax.f32 %v114_v37, 0.0 }
  0xe4   :  { %v117_v43 = vmax.f32 %v115_v41, 0.0 }
  0xe6   :  { %v118_v44 = vpack.c.bf16 %v117_v43, %v116_v42 }
  0xe8   :  { %292 = vmatmul.mubr.bf16.vlgmr.msra.gmra.mrb[0].mxu1 %v118_v44 }
 0x1bb   :  { %v217_v45 = vpop.f32.mrb[0].mxu1 }
 0x1bc   :  { %v256_v46 = vpack.c.bf16 %v104_v35, %v217_v45  ;;  %v293_v47 = vpop.f32.mrb[1].mxu1 }
 0x1bd   :  { %v220_v48 = vpop.f32.mrb[2].mxu1 }
 0x1be   :  { %236 = vst [vmem:[%s396_s5] sm:$0xff] %v256_v46  ;;  %v257_v49 = vpack.c.bf16 %v106_v40, %v220_v48  ;;  %v294_v50 = vpop.f32.mrb[3].mxu1 }
 0x1c0   :  { %237 = vst [vmem:[%s396_s5 + $0x8] sm:$0xff] %v257_v49 }

// kernel: gcn_lpa_forward.3
= control target key start
LH: loop header
LB: loop body
LE: loop exit
PB: predicated region body
PF: predicated region fallthrough
CT: control target
= control target key end

     0   :  { %v198_v0 = vmov 0.0   ;;  %vm199_vm0 = vmmov 0   ;;  %s259_s1 = inlined_call_operand.vmem [shape: bf16[128,128], index: 1, kind: input, shape index: {}]   ;;  %s260_s0 = inlined_call_operand.vmem [shape: bf16[16,128], index: 0, kind: input, shape index: {}]   ;;  %s261_s2 = inlined_call_operand.vmem [shape: bf16[16,128], index: 2, kind: input, shape index: {}]   ;;  %s262_s3 = inlined_call_operand.vmem [shape: bf16[16,256], index: 3, kind: output, shape index: {}]  }
   0x1   :  { %167 = vmatprep.subr.bf16.mxu0 %v198_v0  ;;  %v189_v1 = vld [vmem:[%s259_s1] sm:$0xff]   ;;  %183 = vmatprep.mubr.msk.bf16.mxu0 %vm199_vm0, %v198_v0  ;;  %v190_v2 = vld [vmem:[%s259_s1 + $0x8] sm:$0xff]   ;;  %v191_v3 = vld [vmem:[%s259_s1 + $0x10] sm:$0xff]  }
   0x2   :  { %168 = vmatpush3.bf16.msra.mxu0 %v189_v1  ;;  %v192_v4 = vld [vmem:[%s259_s1 + $0x18] sm:$0xff]   ;;  %v193_v5 = vld [vmem:[%s259_s1 + $0x20] sm:$0xff]   ;;  %v194_v6 = vld [vmem:[%s259_s1 + $0x28] sm:$0xff]  }
   0x3   :  { %169 = vmatprep.subr.bf16.mxu0 %v198_v0  ;;  %v195_v7 = vld [vmem:[%s259_s1 + $0x30] sm:$0xff]   ;;  %v196_v8 = vld [vmem:[%s259_s1 + $0x38] sm:$0xff]   ;;  %v197_v9 = vld [vmem:[%s260_s0] sm:$0xff]  }
   0x4   :  { %v130_v11 = vld [vmem:[%s261_s2 + $0x4] sm:$0xf]  ;;  %v129_v14 = vld [vmem:[%s261_s2] sm:$0xf] }
   0x5   :  { %v134_v16 = vunpack.c.l.b16 %v130_v11 }
   0x6   :  { %170 = vmatpush3.bf16.msra.mxu0 %v190_v2 }
   0x7   :  { %171 = vmatprep.subr.bf16.mxu0 %v198_v0 }
   0xa   :  { %172 = vmatpush3.bf16.msra.mxu0 %v191_v3 }
   0xb   :  { %173 = vmatprep.subr.bf16.mxu0 %v198_v0 }
   0xe   :  { %174 = vmatpush3.bf16.msra.mxu0 %v192_v4 }
   0xf   :  { %175 = vmatprep.subr.bf16.mxu0 %v198_v0 }
  0x12   :  { %176 = vmatpush3.bf16.msra.mxu0 %v193_v5 }
  0x13   :  { %177 = vmatprep.subr.bf16.mxu0 %v198_v0 }
  0x16   :  { %178 = vmatpush3.bf16.msra.mxu0 %v194_v6 }
  0x17   :  { %179 = vmatprep.subr.bf16.mxu0 %v198_v0 }
  0x1a   :  { %180 = vmatpush3.bf16.msra.mxu0 %v195_v7 }
  0x1b   :  { %181 = vmatprep.subr.bf16.mxu0 %v198_v0 }
  0x1e   :  { %182 = vmatpush3.bf16.msra.mxu0 %v196_v8 }
  0x21   :  { %184 = vmatmul.mubr.bf16.vlgmr.msra.gmra.mrb[0].mxu0 %v197_v9 }
  0xf4   :  { %v121_v10 = vpop.f32.mrb[0].mxu0 }
  0xf5   :  { %v185_v12 = vpop.f32.mrb[1].mxu0 }
  0xf6   :  { %v124_v13 = vpop.f32.mrb[2].mxu0 }
  0xf7   :  { %v128_v15 = vpack.c.bf16 %v124_v13, %v121_v10  ;;  %v186_v17 = vpop.f32.mrb[3].mxu0 }
  0xf9   :  { %v137_v18 = vunpack.c.h.b16 %v128_v15  ;;  %v157_v19 = vcombine.low %v128_v15, %v129_v14 }
  0xfb   :  { %v139_v20 = vpack.c.b16 %v134_v16, %v137_v18  ;;  %142 = vst [vmem:[%s262_s3] sm:$0xff] %v157_v19 }
  0xfd   :  { %143 = vst [vmem:[%s262_s3 + $0x8] sm:$0xff] %v139_v20 }

</bundles_post_ra>
